<compile_context>
chip_gen: v6e
topology: v6e:2x2x1
jax: 0.10.0
libtpu: 0.0.40
codegen_flags: <defaults>
</compile_context>

<pallas_src>
import jax
import jax.numpy as jnp
from jax.experimental import pallas as pl
from jax.experimental.pallas import tpu as pltpu


# ---------------------------------------------------------------------------
# Fused kernel: pool + gate-MLP + gated outputs in one pass over (Bt, C, HW).
# ---------------------------------------------------------------------------
def channel_gate_kernel(x_ref, w1t_ref, b1_ref, w2t_ref, b2_ref,
                        out1_ref, out2_ref, g_ref):
    x = x_ref[...]                                        # (Bt, C, HW), native dtype

    # Global average pool (AdaptiveAvgPool2d(1)) with a widening f32 reduction.
    pooled = jnp.mean(x, axis=2, dtype=jnp.float32)       # (Bt, C)

    # fc1 (1x1 conv == matmul) + ReLU, f32 params pre-cast in the wrapper.
    h = jnp.dot(pooled, w1t_ref[...],
                preferred_element_type=jnp.float32) + b1_ref[...]
    h = jnp.maximum(h, 0.0)

    # fc2 (1x1 conv == matmul) + sigmoid gate.
    g = jnp.dot(h, w2t_ref[...],
                preferred_element_type=jnp.float32) + b2_ref[...]
    g = jax.nn.sigmoid(g)                                  # (Bt, C), f32

    # Gate output kept in the compute dtype (f32), lane-dense (Bt, 1, C).
    g_ref[...] = g[:, None, :]

    # Per-element gating in the input dtype; out2 reuses the product.
    gs = g.astype(x.dtype)[:, :, None]                     # (Bt, C, 1)
    gated = x * gs
    out1_ref[...] = gated
    out2_ref[...] = x - gated                              # == x*(1-g) up to ~1 ulp


# ---------------------------------------------------------------------------
# Streaming fallback kernel: gate precomputed, just apply it over HW chunks.
# ---------------------------------------------------------------------------
def apply_gate_kernel(x_ref, g_ref, out1_ref, out2_ref):
    x = x_ref[...]                                         # (1, C, HWc)
    g = g_ref[...].astype(x.dtype)                         # (1, C, 1)
    gated = x * g
    out1_ref[...] = gated
    out2_ref[...] = x - gated


def _vmem_capacity_bytes():
    try:
        return int(pltpu.get_tpu_info().vmem_capacity_bytes)
    except Exception:
        return 64 << 20          # conservative fallback (v7x per-TC size)


def _pick_batch_tile(B, C, HW, itemsize, vmem_cap):
    """Pick batch-tile size Bt from an honest, generation-aware VMEM budget.

    Per grid step we hold:
      * double-buffered pipeline tiles: (1 input + 2 outputs) * 2  = 6 tiles
      * the in-kernel `gated` intermediate                        ~= 1 tile
      * slack for vregs / small gate intermediates                ~= 1 tile
    """
    per_b = 8 * C * HW * itemsize
    # Stay well inside scoped VMEM on every generation (v7x has only 64 MiB
    # per TC; v5e's 16 MiB default scoped limit is raised explicitly below).
    budget = min(int(vmem_cap * 0.55), 40 << 20)
    bt = max(1, budget // max(per_b, 1))
    if B >= 2:
        # Guarantee >= 2 grid steps: keeps v7x's second TC busy and gives the
        # DMA pipeline something to overlap.
        bt = min(bt, pl.cdiv(B, 2))
    bt = min(bt, B)
    fits = per_b <= budget       # can at least one sample's slab be fused?
    return bt, per_b, budget, fits


def channel_gate_sub(x, w1, b1, w2, b2):
    """ChannelGate_sub.forward (sigmoid gate, no layer_norm, return_gates=False).

    x: (B, C, H, W) NCHW.  w1: (hidden, C), b1: (hidden,), w2: (C, hidden), b2: (C,).
    Returns (x * g, x * (1 - g), g) with g of shape (B, C, 1, 1) in float32.
    """
    B, C, H, W = x.shape
    HW = H * W
    hidden = w1.shape[0]
    itemsize = jnp.dtype(x.dtype).itemsize

    x3 = x.reshape(B, C, HW)

    # Lane-dense, f32 parameter layouts (cast once in the wrapper, not per step).
    w1_t = w1.reshape(hidden, C).T.astype(jnp.float32)     # (C, hidden)
    b1_r = b1.reshape(1, hidden).astype(jnp.float32)       # (1, hidden)
    w2_t = w2.reshape(C, hidden).T.astype(jnp.float32)     # (hidden, C)
    b2_r = b2.reshape(1, C).astype(jnp.float32)            # (1, C)

    vmem_cap = _vmem_capacity_bytes()
    bt, per_b, budget, fits = _pick_batch_tile(B, C, HW, itemsize, vmem_cap)

    param_bytes = 4 * (2 * C * hidden + hidden + C)

    if fits:
        # ---------------- fused path ----------------
        steps = pl.cdiv(B, bt)
        B_pad = steps * bt
        if B_pad != B:
            x3 = jnp.pad(x3, ((0, B_pad - B), (0, 0), (0, 0)))

        residency = bt * per_b + 2 * param_bytes + 4 * bt * C * 4
        vmem_limit = int(min(max(residency + (4 << 20), 32 << 20),
                             max(int(vmem_cap * 0.85), 32 << 20)))

        cost = pl.CostEstimate(
            flops=B * C * HW * 3 + 4 * B * C * hidden,
            transcendentals=B * C,
            bytes_accessed=3 * B * C * HW * itemsize + B * C * 4
                           + 4 * (w1_t.size + b1_r.size + w2_t.size + b2_r.size),
        )

        out1, out2, gates = pl.pallas_call(
            channel_gate_kernel,
            out_shape=(
                jax.ShapeDtypeStruct((B_pad, C, HW), x.dtype),
                jax.ShapeDtypeStruct((B_pad, C, HW), x.dtype),
                jax.ShapeDtypeStruct((B_pad, 1, C), jnp.float32),
            ),
            grid=(steps,),
            in_specs=[
                pl.BlockSpec((bt, C, HW), lambda b: (b, 0, 0)),
                pl.BlockSpec((C, hidden), lambda b: (0, 0)),
                pl.BlockSpec((1, hidden), lambda b: (0, 0)),
                pl.BlockSpec((hidden, C), lambda b: (0, 0)),
                pl.BlockSpec((1, C), lambda b: (0, 0)),
            ],
            out_specs=(
                pl.BlockSpec((bt, C, HW), lambda b: (b, 0, 0)),
                pl.BlockSpec((bt, C, HW), lambda b: (b, 0, 0)),
                pl.BlockSpec((bt, 1, C), lambda b: (b, 0, 0)),
            ),
            compiler_params=pltpu.CompilerParams(
                dimension_semantics=("parallel",),
                vmem_limit_bytes=vmem_limit),
            cost_estimate=cost,
        )(x3, w1_t, b1_r, w2_t, b2_r)

        out1 = out1[:B].reshape(B, C, H, W)
        out2 = out2[:B].reshape(B, C, H, W)
        gates = gates[:B].reshape(B, C, 1, 1)
        return out1, out2, gates

    # ---------------- streaming fallback (huge C*HW per sample) ----------------
    # Tiny gate MLP as plain XLA (O(B*C) work, negligible); Pallas streams the
    # HBM-bound multiply over (1, C, HW_chunk) tiles.
    pooled = jnp.mean(x3.astype(jnp.float32), axis=2)                  # (B, C)
    h = jnp.maximum(pooled @ w1_t + b1_r, 0.0)
    g = jax.nn.sigmoid(h @ w2_t + b2_r)                                # (B, C) f32
    g3 = g.reshape(B, C, 1)

    hwc = max(128, (budget // max(8 * C * itemsize, 1)) // 128 * 128)
    hwc = min(hwc, pl.cdiv(HW, 128) * 128)
    HW_pad = pl.cdiv(HW, hwc) * hwc
    x3p = jnp.pad(x3, ((0, 0), (0, 0), (0, HW_pad - HW))) if HW_pad != HW else x3

    residency = 8 * C * hwc * itemsize + 2 * C * 4
    vmem_limit = int(min(max(residency + (4 << 20), 32 << 20),
                         max(int(vmem_cap * 0.85), 32 << 20)))

    out1, out2 = pl.pallas_call(
        apply_gate_kernel,
        out_shape=(
            jax.ShapeDtypeStruct((B, C, HW_pad), x.dtype),
            jax.ShapeDtypeStruct((B, C, HW_pad), x.dtype),
        ),
        grid=(B, HW_pad // hwc),
        in_specs=[
            pl.BlockSpec((1, C, hwc), lambda b, s: (b, 0, s)),
            pl.BlockSpec((1, C, 1), lambda b, s: (b, 0, 0)),
        ],
        out_specs=(
            pl.BlockSpec((1, C, hwc), lambda b, s: (b, 0, s)),
            pl.BlockSpec((1, C, hwc), lambda b, s: (b, 0, s)),
        ),
        compiler_params=pltpu.CompilerParams(
            dimension_semantics=("parallel", "parallel"),
            vmem_limit_bytes=vmem_limit),
    )(x3p, g3)

    out1 = out1[:, :, :HW].reshape(B, C, H, W)
    out2 = out2[:, :, :HW].reshape(B, C, H, W)
    return out1, out2, g.reshape(B, C, 1, 1)


def reference(x, w1, b1, w2, b2):
    # Pure-JAX reference of ChannelGate_sub.forward (sigmoid gate, no layer_norm).
    pooled = jnp.mean(x, axis=(2, 3))                                  # (B, C)
    h = jnp.maximum(pooled @ w1.T + b1, 0.0)                           # (B, hidden)
    g = jax.nn.sigmoid(h @ w2.T + b2)                                  # (B, C)
    g4 = g[:, :, None, None]
    return x * g4, x * (1.0 - g4), g4


if __name__ == "__main__":
    B, C, H, W = 2, 64, 16, 16
    reduction = 16
    hidden = C // reduction  # 4

    key = jax.random.PRNGKey(0)
    kx, k1, k2, k3, k4 = jax.random.split(key, 5)

    x = jax.random.normal(kx, (B, C, H, W), dtype=jnp.float32)
    # Synthetic params (PyTorch fc1: Conv2d(C, C//r, 1); fc2: Conv2d(C//r, C, 1)).
    w1 = 0.1 * jax.random.normal(k1, (hidden, C), dtype=jnp.float32)
    b1 = 0.1 * jax.random.normal(k2, (hidden,), dtype=jnp.float32)
    w2 = 0.1 * jax.random.normal(k3, (C, hidden), dtype=jnp.float32)
    b2 = 0.1 * jax.random.normal(k4, (C,), dtype=jnp.float32)

    out1, out2, gates = channel_gate_sub(x, w1, b1, w2, b2)
    jax.block_until_ready((out1, out2, gates))

    r1, r2, rg = reference(x, w1, b1, w2, b2)
    assert jnp.allclose(out1, r1, atol=1e-5, rtol=1e-5)
    assert jnp.allclose(out2, r2, atol=1e-5, rtol=1e-5)
    assert jnp.allclose(gates, rg, atol=1e-5, rtol=1e-5)

    print("KERNEL_OK")
</pallas_src>

<mosaic_0001>
module attributes {stable_mosaic.version = 11 : i64} {
  func.func @channel_gate_kernel(%arg0: i32, %arg1: memref<1x64x256xf32, #tpu.memory_space<vmem>>, %arg2: memref<64x4xf32, #tpu.memory_space<vmem>>, %arg3: memref<1x4xf32, #tpu.memory_space<vmem>>, %arg4: memref<4x64xf32, #tpu.memory_space<vmem>>, %arg5: memref<1x64xf32, #tpu.memory_space<vmem>>, %arg6: memref<1x64x256xf32, #tpu.memory_space<vmem>>, %arg7: memref<1x64x256xf32, #tpu.memory_space<vmem>>, %arg8: memref<1x1x64xf32, #tpu.memory_space<vmem>>) attributes {dimension_semantics = [#tpu.dimension_semantics<parallel>], iteration_bounds = array<i64: 2>, scalar_prefetch = 0 : i64, scratch_operands = 0 : i64, tpu.core_type = #tpu.core_type<tc>, window_params = [{transform_indices = @transform_0, window_bounds = array<i64: 1, 64, 256>}, {pipeline_mode = #tpu.pipeline_mode<synchronous>, transform_indices = @transform_1, window_bounds = array<i64: 64, 4>}, {pipeline_mode = #tpu.pipeline_mode<synchronous>, transform_indices = @transform_2, window_bounds = array<i64: 1, 4>}, {pipeline_mode = #tpu.pipeline_mode<synchronous>, transform_indices = @transform_3, window_bounds = array<i64: 4, 64>}, {pipeline_mode = #tpu.pipeline_mode<synchronous>, transform_indices = @transform_4, window_bounds = array<i64: 1, 64>}, {transform_indices = @transform_5, window_bounds = array<i64: 1, 64, 256>}, {transform_indices = @transform_6, window_bounds = array<i64: 1, 64, 256>}, {transform_indices = @transform_7, window_bounds = array<i64: 1, 1, 64>}]} {
    %c0 = arith.constant 0 : index
    %c0_0 = arith.constant 0 : index
    %c0_1 = arith.constant 0 : index
    %0 = vector.load %arg1[%c0, %c0_0, %c0_1] : memref<1x64x256xf32, #tpu.memory_space<vmem>>, vector<1x64x256xf32>
    %cst = arith.constant dense<0.000000e+00> : vector<1x64xf32>
    %1 = vector.multi_reduction <add>, %0, %cst [2] : vector<1x64x256xf32> to vector<1x64xf32>
    %cst_2 = arith.constant 2.560000e+02 : f32
    %2 = vector.broadcast %cst_2 : f32 to vector<1x64xf32>
    %3 = arith.divf %1, %2 : vector<1x64xf32>
    %c0_3 = arith.constant 0 : index
    %c0_4 = arith.constant 0 : index
    %4 = vector.load %arg2[%c0_3, %c0_4] : memref<64x4xf32, #tpu.memory_space<vmem>>, vector<64x4xf32>
    %cst_5 = arith.constant dense<0.000000e+00> : vector<1x4xf32>
    %5 = tpu.matmul %3, %4, %cst_5 {dimension_numbers = #tpu.dot_dimension_numbers<[1], [0], [0], [1], [0, 0, 1, 1], [], []>} : vector<1x64xf32>, vector<64x4xf32>, vector<1x4xf32> -> vector<1x4xf32>
    %c0_6 = arith.constant 0 : index
    %c0_7 = arith.constant 0 : index
    %6 = vector.load %arg3[%c0_6, %c0_7] : memref<1x4xf32, #tpu.memory_space<vmem>>, vector<1x4xf32>
    %7 = arith.addf %5, %6 : vector<1x4xf32>
    %cst_8 = arith.constant 0.000000e+00 : f32
    %8 = vector.broadcast %cst_8 : f32 to vector<1x4xf32>
    %9 = arith.maximumf %7, %8 : vector<1x4xf32>
    %c0_9 = arith.constant 0 : index
    %c0_10 = arith.constant 0 : index
    %10 = vector.load %arg4[%c0_9, %c0_10] : memref<4x64xf32, #tpu.memory_space<vmem>>, vector<4x64xf32>
    %cst_11 = arith.constant dense<0.000000e+00> : vector<1x64xf32>
    %11 = tpu.matmul %9, %10, %cst_11 {dimension_numbers = #tpu.dot_dimension_numbers<[1], [0], [0], [1], [0, 0, 1, 1], [], []>} : vector<1x4xf32>, vector<4x64xf32>, vector<1x64xf32> -> vector<1x64xf32>
    %c0_12 = arith.constant 0 : index
    %c0_13 = arith.constant 0 : index
    %12 = vector.load %arg5[%c0_12, %c0_13] : memref<1x64xf32, #tpu.memory_space<vmem>>, vector<1x64xf32>
    %13 = arith.addf %11, %12 : vector<1x64xf32>
    %14 = arith.negf %13 : vector<1x64xf32>
    %15 = math.exp %14 : vector<1x64xf32>
    %cst_14 = arith.constant 1.000000e+00 : f32
    %16 = vector.broadcast %cst_14 : f32 to vector<1x64xf32>
    %17 = arith.addf %16, %15 : vector<1x64xf32>
    %18 = arith.divf %16, %17 : vector<1x64xf32>
    %19 = vector.shape_cast %18 : vector<1x64xf32> to vector<1x1x64xf32>
    %c0_15 = arith.constant 0 : index
    %c0_16 = arith.constant 0 : index
    %c0_17 = arith.constant 0 : index
    %20 = vector.load %arg8[%c0_15, %c0_16, %c0_17] : memref<1x1x64xf32, #tpu.memory_space<vmem>>, vector<1x1x64xf32>
    tpu.vector_store %arg8[%c0_15, %c0_16, %c0_17], %19 {strides = array<i32>} : memref<1x1x64xf32, #tpu.memory_space<vmem>>, vector<1x1x64xf32>,
    %21 = vector.shape_cast %18 : vector<1x64xf32> to vector<1x64x1xf32>
    %22 = vector.broadcast %21 : vector<1x64x1xf32> to vector<1x64x256xf32>
    %23 = arith.mulf %0, %22 : vector<1x64x256xf32>
    %c0_18 = arith.constant 0 : index
    %c0_19 = arith.constant 0 : index
    %c0_20 = arith.constant 0 : index
    %24 = vector.load %arg6[%c0_18, %c0_19, %c0_20] : memref<1x64x256xf32, #tpu.memory_space<vmem>>, vector<1x64x256xf32>
    tpu.vector_store %arg6[%c0_18, %c0_19, %c0_20], %23 {strides = array<i32>} : memref<1x64x256xf32, #tpu.memory_space<vmem>>, vector<1x64x256xf32>,
    %25 = arith.subf %0, %23 : vector<1x64x256xf32>
    %c0_21 = arith.constant 0 : index
    %c0_22 = arith.constant 0 : index
    %c0_23 = arith.constant 0 : index
    %26 = vector.load %arg7[%c0_21, %c0_22, %c0_23] : memref<1x64x256xf32, #tpu.memory_space<vmem>>, vector<1x64x256xf32>
    tpu.vector_store %arg7[%c0_21, %c0_22, %c0_23], %25 {strides = array<i32>} : memref<1x64x256xf32, #tpu.memory_space<vmem>>, vector<1x64x256xf32>,
    return
  }
  func.func @transform_0(%arg0: i32) -> (i32, i32, i32) {
    %c0_i32 = arith.constant 0 : i32
    %c0_i32_0 = arith.constant 0 : i32
    %c0_i32_1 = arith.constant 0 : i32
    return %arg0, %c0_i32, %c0_i32_0 : i32, i32, i32
  }
  func.func @transform_1(%arg0: i32) -> (i32, i32) {
    %c0_i32 = arith.constant 0 : i32
    %c0_i32_0 = arith.constant 0 : i32
    %c0_i32_1 = arith.constant 0 : i32
    return %c0_i32, %c0_i32_0 : i32, i32
  }
  func.func @transform_2(%arg0: i32) -> (i32, i32) {
    %c0_i32 = arith.constant 0 : i32
    %c0_i32_0 = arith.constant 0 : i32
    %c0_i32_1 = arith.constant 0 : i32
    return %c0_i32, %c0_i32_0 : i32, i32
  }
  func.func @transform_3(%arg0: i32) -> (i32, i32) {
    %c0_i32 = arith.constant 0 : i32
    %c0_i32_0 = arith.constant 0 : i32
    %c0_i32_1 = arith.constant 0 : i32
    return %c0_i32, %c0_i32_0 : i32, i32
  }
  func.func @transform_4(%arg0: i32) -> (i32, i32) {
    %c0_i32 = arith.constant 0 : i32
    %c0_i32_0 = arith.constant 0 : i32
    %c0_i32_1 = arith.constant 0 : i32
    return %c0_i32, %c0_i32_0 : i32, i32
  }
  func.func @transform_5(%arg0: i32) -> (i32, i32, i32) {
    %c0_i32 = arith.constant 0 : i32
    %c0_i32_0 = arith.constant 0 : i32
    %c0_i32_1 = arith.constant 0 : i32
    return %arg0, %c0_i32, %c0_i32_0 : i32, i32, i32
  }
  func.func @transform_6(%arg0: i32) -> (i32, i32, i32) {
    %c0_i32 = arith.constant 0 : i32
    %c0_i32_0 = arith.constant 0 : i32
    %c0_i32_1 = arith.constant 0 : i32
    return %arg0, %c0_i32, %c0_i32_0 : i32, i32, i32
  }
  func.func @transform_7(%arg0: i32) -> (i32, i32, i32) {
    %c0_i32 = arith.constant 0 : i32
    %c0_i32_0 = arith.constant 0 : i32
    %c0_i32_1 = arith.constant 0 : i32
    return %arg0, %c0_i32, %c0_i32_0 : i32, i32, i32
  }
}

</mosaic_0001>

<bundles_post_ra>
// kernel: tpu_custom_call.1
= control target key start
LH: loop header
LB: loop body
LE: loop exit
PB: predicated region body
PF: predicated region fallthrough
CT: control target
= control target key end

     0   :  { %s1604_s0 = inlined_call_operand.hbm [shape: f32[2,64,256], index: 0, kind: input, shape index: {}]   ;;  %s1605_s1 = inlined_call_operand.vmem [shape: f32[64,4], index: 1, kind: input, shape index: {}]   ;;  %s1606_s2 = inlined_call_operand.vmem [shape: f32[1,4], index: 2, kind: input, shape index: {}]   ;;  %s1607_s3 = inlined_call_operand.vmem [shape: f32[4,64], index: 3, kind: input, shape index: {}]   ;;  %s1608_s4 = inlined_call_operand.vmem [shape: f32[1,64], index: 4, kind: input, shape index: {}]   ;;  %s1609_s5 = inlined_call_operand.hbm [shape: f32[2,64,256], index: 5, kind: output, shape index: {0}]   ;;  %s1610_s6 = inlined_call_operand.hbm [shape: f32[2,64,256], index: 6, kind: output, shape index: {1}]   ;;  %s1611_s7 = inlined_call_operand.hbm [shape: f32[2,1,64], index: 7, kind: output, shape index: {2}]  }
   0x1   :  { %1615 = sst [smem:[#allocation12_spill]] %s1604_s0 }
   0x2   :  { %1616 = sst [smem:[#allocation13_spill]] %s1605_s1 }
   0x3   :  { %1617 = sst [smem:[#allocation14_spill]] %s1606_s2 }
   0x4   :  { %13 = vsyncpa [#allocation3], 0 }
   0x5   :  { %15 = vsyncpa [#allocation3 + $0x1], 0 }
   0x6   :  { %16 = vsyncpa [#allocation4], 0 }
   0x7   :  { %18 = vsyncpa [#allocation4 + $0x1], 0 }
   0x8   :  { %19 = vsyncpa [#allocation7], 0 }
   0x9   :  { %21 = vsyncpa [#allocation7 + $0x1], 0  ;;  %s1205_s24 = smov 0   ;;  %s1207_s25 = smov 0  }
   0xa   :  { %s1209_s26 = smov 0   ;;  %s1211_s27 = smov 0  }
   0xb LB: > { %s1226_s28 = sadd.s32 4294967295, %s1153_s27   ;;  %s1612_s29 = sadd.s32 4294967294, %s1153_s27   ;;  %s1153_s27 = sphi %s1211_s27, %s1636_s27   ;;  %s1149_s26 = sphi %s1209_s26, %s1635_s26   ;;  %s1145_s25 = sphi %s1207_s25, %s1634_s25   ;;  %s1141_s24 = sphi %s1205_s24, %s1633_s24  }
   0xc   : > { %s1230_s30 = sadd.s32 1, %s1153_s27   ;;  %s34_s8 = sadd.s32 1, %s1149_s26 }
   0xd   : > { %s31_s9 = ssub.s32 %s1153_s27, %s1230_s30  ;;  %p41_p0 = scmp.ne.s32.totalorder %s1149_s26, %s1145_s25 }
   0xe   : > { %p32_p1 = scmp.eq.s32.totalorder %s31_s9, 0  ;;  %p42_p2 = scmp.eq.s32.totalorder %s1153_s27, 0 }
   0xf   : > { %p47_p3 = scmp.ne.s32.totalorder %s1145_s25, %s1141_s24  ;;  %p48_p4 = scmp.eq.s32.totalorder %s1226_s28, 0 }
  0x10   : > { %s1242_s10 = scalar_select %p32_p1, %s1149_s26, %s34_s8  }
  0x11   : > { %p1244_p5 = por %p42_p2, %p41_p0  ;;  %p1248_p6 = por %p48_p4, %p47_p3 }
  0x12   : > { %p155_p7 = scmp.eq.s32.totalorder %s1226_s28, 1  ;;  %p161_p8 = scmp.eq.s32.totalorder %s1612_s29, 1 }
  0x13   : > { %s1619_s12 = scalar_select %p1248_p6, 1, 0 }
  0x14   : > { %p961_p10 = scmp.lt.s32.totalorder %s1153_s27, 2  ;;  %p1257_p11 = por %p155_p7, %p41_p0 }
  0x15   : > { %p1261_p12 = por %p161_p8, %p47_p3  ;;  %s245_s15 = sand.u32 1, %s1149_s26  }
  0x16   : > { %s1620_s13 = scalar_select %p1257_p11, 1, 0 }
  0x17   : > { %s1621_s14 = scalar_select %p1261_p12, 1, 0 }
  0x18   : > { %s901_s16 = sshll.u32 %s1153_s27, 11  ;;  %s881_s17 = sshll.u32 %s245_s15, 7 }
  0x19   : > { %s1622_s0 = sld [smem:[#allocation12_spill]]  ;;  %s249_s21 = scalar_lea.vmem [#allocation2], %s881_s17 }
  0x1a   : > { %s256_s22 = sshll.u32 %s249_s21, 4  ;;  %p1274_p13 = pnand %p961_p10, %p1244_p5  ;;  %s1278_s22 = int_to_ptr.vmem [resolvable:$true] %s256_s22 }
  0x1b   : > { %s1280_s8 = scalar_lea.sflag [#allocation3], %s245_s15 }
  0x1c   : > { %p1007_p1 = pneg %p1274_p13 }
  0x1f   : > { %s1270_s20 = scalar_lea.hbm %s1622_s0, %s901_s16  ;;  %s1010_s17 = scalar_lea.hbm %s1622_s0, 4096 }
  0x20   : > { %s1005_s9 = scalar_lea.hbm %s1270_s20, 2048  ;;  %p1011_p4 = scmp.lt.s32.totalorder %s1270_s20, %s1622_s0 }
  0x21   : > { %p1006_p0 = scmp.ne.s32.totalorder %s1270_s20, %s1005_s9  ;;  %p1012_p5 = scmp.lt.s32.totalorder %s1010_s17, %s1005_s9 }
  0x23   : > { %p1008_p2 = pnand %p1007_p1, %p1006_p0  ;;  %p1013_p7 = por %p1012_p5, %p1011_p4 }
  0x25   : > { %p1009_p3 = pneg %p1008_p2 }
  0x27   : > { %p1014_p8 = pnand %p1013_p7, %p1009_p3 }
  0x29   : > { %1017 = shalt.err (!%p1014_p8)
}
  0x2a   : > { %s1018_s15 = scalar_lea.vmem %s1278_s22, 2048  ;;  %s1155_s21 = smov [#allocation2]  }
  0x2b   : > { %p1019_p10 = scmp.ne.s32.totalorder %s1278_s22, %s1018_s15  ;;  %s1023_s29 = sshll.u32 %s1155_s21, 4  ;;  %s1024_s29 = int_to_ptr.vmem [resolvable:$false] %s1023_s29 }
  0x2c   : > { %s1025_s16 = scalar_lea.vmem %s1024_s29, 4096  ;;  %p1026_p2 = scmp.lt.s32.totalorder %s1278_s22, %s1024_s29 }
  0x2d   : > { %p1021_p9 = pnand %p1019_p10, %p1007_p1  ;;  %p1027_p12 = scmp.lt.s32.totalorder %s1025_s16, %s1018_s15 }
  0x2f   : > { %p1022_p0 = pneg %p1021_p9  ;;  %p1028_p11 = por %p1027_p12, %p1026_p2 }
  0x31   : > { %p1029_p6 = pnand %p1028_p11, %p1022_p0 }
  0x33   : > { %1032 = shalt.err (!%p1029_p6)
}
  0x34   : > { %s1156_s9 = smov 256   ;;  %s1157_s18 = smov 16  }
  0x35   : > { %950 = dma.hbm_to_vmem [thread:$0]  (!%p1274_p13), %s1270_s20, 2048, %s1278_s22, %s1280_s8, %s1156_s9, %s1156_s9, %s1157_s18  }
  0x36   : > { %p884_p9 = scmp.ge.s32.totalorder %s1153_s27, 1  ;;  %p264_p1 = scmp.lt.s32.totalorder %s1153_s27, 3 }
  0x38   : > { %p265_p3 = pnand %p884_p9, %p264_p1 }
  0x39   : > { %s1304_s29 = sand.u32 (!%p265_p3), 1, %s1145_s25   ;;  %p1624_p6 = scmp.ne.s32.totalorder (!%p265_p3), %s1619_s12, 0 }
  0x3a   : > { %268 = sbr.rel (%p265_p3) target bundleno = 846 (0x34e), region = 40  ;;  %s1307_s17 = sshll.u32 (!%p265_p3), %s1304_s29, 7 }
  0x3b   : > { %s271_s11 = scalar_lea.sflag (!%p265_p3), [#allocation3], %s1304_s29  ;;  %s274_s19 = scalar_lea.vmem (!%p265_p3), [#allocation2], %s1307_s17 }
  0x3f   : > { %1128 = dma.done.wait (%p1624_p6), %s271_s11, 2048  }
  0x40   : > { %1130 = vsyncadd (%p1624_p6), %s271_s11, 4294965248  ;;  %v1315_v0 = vld [vmem:[%s274_s19] sm:$0xff]  ;;  %v1317_v1 = vld [vmem:[%s274_s19 + $0x8] sm:$0xff]  ;;  %v1158_v24 = vmov 0.0   ;;  %s1625_s1 = sld [smem:[#allocation13_spill]]  ;;  %vm1159_vm0 = vmmov 0   ;;  %v380_v33 = vlaneseq }
  0x41   : > { %v1319_v2 = vld [vmem:[%s274_s19 + $0x20] sm:$0xff]  ;;  %v330_v3 = vadd.f32 %v1317_v1, %v1315_v0  ;;  %v1323_v4 = vld [vmem:[%s274_s19 + $0x28] sm:$0xff]  ;;  %v1325_v5 = vld [vmem:[%s274_s19 + $0x10] sm:$0xff]  ;;  %915 = vmatprep.subr.mxu0 %v1158_v24  ;;  %934 = vmatprep.subr.mxu1 %v1158_v24  ;;  %vm391_vm1 = vcmask 130112   ;;  %vm398_vm2 = vcmask 195712   ;;  %vm405_vm3 = vcmask 261312  }
  0x42   : > { %v1327_v6 = vld [vmem:[%s274_s19 + $0x18] sm:$0xff]  ;;  %v336_v7 = vadd.f32 %v1323_v4, %v1319_v2  ;;  %v1331_v8 = vld [vmem:[%s274_s19 + $0x30] sm:$0xff]  ;;  %v1339_v12 = vld [vmem:[%s274_s19 + $0x40] sm:$0xff]  ;;  %931 = vmatprep.mubr.msk.f32.mxu0 %vm1159_vm0, %v1158_v24  ;;  %936 = vmatprep.mubr.msk.f32.mxu1 %vm1159_vm0, %v1158_v24  ;;  %v381_v34 = vand.u32 127, %v380_v33  ;;  %v1387_v35 = vshrl.u32 %v380_v33, 7  ;;  %vm412_vm4 = vcmask 326912  }
  0x43   : > { %v1333_v9 = vld [vmem:[%s274_s19 + $0x38] sm:$0xff]  ;;  %331 = vadd.xlane.f32.xlu0 %v330_v3  ;;  %v333_v10 = vadd.f32 %v1327_v6, %v1325_v5  ;;  %v1341_v13 = vld [vmem:[%s274_s19 + $0x48] sm:$0xff]  ;;  %v1343_v14 = vld [vmem:[%s274_s19 + $0x50] sm:$0xff]  ;;  %vm419_vm5 = vcmask 392512   ;;  %vm426_vm6 = vcmask 458112   ;;  %vm433_vm7 = vcmask 523712  }
  0x44   : > { %337 = vadd.xlane.f32.xlu1 %v336_v7  ;;  %v339_v11 = vadd.f32 %v1333_v9, %v1331_v8  ;;  %v1345_v15 = vld [vmem:[%s274_s19 + $0x58] sm:$0xff]  ;;  %v342_v16 = vadd.f32 %v1341_v13, %v1339_v12  ;;  %v1351_v18 = vld [vmem:[%s274_s19 + $0x60] sm:$0xff]  ;;  %v1353_v19 = vld [vmem:[%s274_s19 + $0x68] sm:$0xff]  ;;  %v386_v36 = vadd.s32 4294967288, %v381_v34  ;;  %v393_v38 = vadd.s32 4294967280, %v381_v34  ;;  %s1626_s2 = sld [smem:[#allocation14_spill]] }
  0x45   : > { %v345_v17 = vadd.f32 %v1345_v15, %v1343_v14  ;;  %v1355_v20 = vld [vmem:[%s274_s19 + $0x70] sm:$0xff]  ;;  %v1357_v21 = vld [vmem:[%s274_s19 + $0x78] sm:$0xff]  ;;  %v348_v22 = vadd.f32 %v1353_v19, %v1351_v18  ;;  %v400_v39 = vadd.s32 4294967272, %v381_v34  ;;  %v384_v41 = vsub.s32 %v381_v34, %v1387_v35  ;;  %s313_s11 = scalar_lea.vmem [#allocation8], %s1304_s29  ;;  %s1416_s19 = scalar_lea.vmem [#allocation5], %s1307_s17 }
  0x46   : > { %v351_v23 = vadd.f32 %v1357_v21, %v1355_v20  ;;  %v370_v25 = vld [vmem:[%s1625_s1 + $0x38] sm:$0xff]  ;;  %v369_v26 = vld [vmem:[%s1625_s1 + $0x30] sm:$0xff]  ;;  %v368_v27 = vld [vmem:[%s1625_s1 + $0x28] sm:$0xff]  ;;  %v389_v43 = vsub.s32 %v386_v36, %v1387_v35  ;;  %v407_v44 = vadd.s32 4294967264, %v381_v34  ;;  %v396_v45 = vsub.s32 %v393_v38, %v1387_v35  ;;  %s1427_s12 = scalar_lea.vmem [#allocation6], %s1307_s17  ;;  %s902_s20 = sshll.u32 %s1226_s28, 11 }
  0x47   : > { %334 = vadd.xlane.f32.xlu0 %v333_v10  ;;  %916 = vmatpush3.msra.mxu0 %v370_v25  ;;  %v367_v28 = vld [vmem:[%s1625_s1 + $0x20] sm:$0xff]  ;;  %v366_v29 = vld [vmem:[%s1625_s1 + $0x18] sm:$0xff]  ;;  %v365_v30 = vld [vmem:[%s1625_s1 + $0x10] sm:$0xff]  ;;  %v403_v48 = vsub.s32 %v400_v39, %v1387_v35  ;;  %v414_v49 = vadd.s32 4294967256, %v381_v34  ;;  %v421_v56 = vadd.s32 4294967248, %v381_v34  ;;  %v428_v61 = vadd.s32 4294967240, %v381_v34  ;;  %s1485_s9 = scalar_lea.hbm %s1609_s5, %s902_s20 }
  0x48   : > { %340 = vadd.xlane.f32.xlu1 %v339_v11  ;;  %917 = vmatprep.subr.mxu0 %v1158_v24  ;;  %v364_v31 = vld [vmem:[%s1625_s1 + $0x8] sm:$0xff]  ;;  %v363_v32 = vld [vmem:[%s1625_s1] sm:$0xff]  ;;  %v410_v55 = vsub.s32 %v407_v44, %v1387_v35  ;;  %vm435_vm8 = vcmask 523264   ;;  %vm515_vm9 = vcmask 1043456   ;;  %vm511_vm10 = vcmask 31744   ;;  %s719_s22 = sshll.u32 %s1416_s19, 4  ;;  %s1487_s22 = int_to_ptr.vmem [resolvable:$true] %s719_s22 }
  0x49   : > { %918 = vmatpush3.msra.mxu0 %v369_v26  ;;  %v417_v60 = vsub.s32 %v414_v49, %v1387_v35  ;;  %v509_v34 = vld [vmem:[%s1607_s3] sm:$0xf]  ;;  %vm595_vm11 = vcmask 516096   ;;  %s735_s23 = sshll.u32 %s1427_s12, 4  ;;  %s898_s8 = sshll.u32 %s1226_s28, 4  ;;  %s1494_s23 = int_to_ptr.vmem [resolvable:$true] %s735_s23 }
  0x4a   : > { %919 = vmatprep.subr.mxu0 %v1158_v24  ;;  %935 = vmatpush3.msk.msra.mxu1 %vm515_vm9, %v509_v34  ;;  %v371_v36 = vld [vmem:[%s1626_s2] sm:$0x1]  ;;  %s751_s15 = sshll.u32 %s313_s11, 4  ;;  %s1503_s0 = scalar_lea.hbm %s1611_s7, %s898_s8  ;;  %s1505_s15 = int_to_ptr.vmem [resolvable:$true] %s751_s15 }
  0x4b   : > { %343 = vadd.xlane.f32.xlu0 %v342_v16  ;;  %920 = vmatpush3.msra.mxu0 %v368_v27  ;;  %s1033_s18 = scalar_lea.vmem %s1487_s22, 2048  ;;  %p1627_p12 = scmp.ne.s32.totalorder %s1620_s13, 0 }
  0x4c   : > { %346 = vadd.xlane.f32.xlu1 %v345_v17  ;;  %921 = vmatprep.subr.mxu0 %v1158_v24  ;;  %v424_v17 = vsub.s32 %v421_v56, %v1387_v35  ;;  %p1034_p11 = scmp.ne.s32.totalorder %s1487_s22, %s1033_s18 }
  0x4d   : > { %922 = vmatpush3.msra.mxu0 %v367_v28 }
  0x4e   : > { %923 = vmatprep.subr.mxu0 %v1158_v24  ;;  %p1035_p13 = pnand %p1034_p11, %p1627_p12 }
  0x4f   : > { %349 = vadd.xlane.f32.xlu0 %v348_v22  ;;  %924 = vmatpush3.msra.mxu0 %v366_v29 }
  0x50   : > { %352 = vadd.xlane.f32.xlu1 %v351_v23  ;;  %925 = vmatprep.subr.mxu0 %v1158_v24  ;;  %p1036_p4 = pneg %p1035_p13 }
  0x51   : > { %926 = vmatpush3.msra.mxu0 %v365_v30 }
  0x52   : > { %927 = vmatprep.subr.mxu0 %v1158_v24 }
  0x53   : > { %928 = vmatpush3.msra.mxu0 %v364_v31 }
  0x54   : > { %929 = vmatprep.subr.mxu0 %v1158_v24  ;;  %v431_v24 = vsub.s32 %v428_v61, %v1387_v35 }
  0x55   : > { %930 = vmatpush3.msra.mxu0 %v363_v32 }
  0xcc   : > { %v332_v37 = vpop.xlane.xlu0 %331 }
  0xcd   : > { %v338_v40 = vpop.xlane.xlu1 %337  ;;  %v355_v42 = vmul.f32 0.00390625, %v332_v37 }
  0xce   : > { %v357_v46 = vmul.f32 0.00390625, %v338_v40 }
  0xcf   : > { %v385_v53 = vrot.slane %v355_v42, %v384_v41  ;;  %v510_v41 = vld [vmem:[%s1608_s4] sm:$0x1] }
  0xd0   : > { %v335_v47 = vpop.xlane.xlu0 %334  ;;  %v397_v57 = vrot.slane %v357_v46, %v396_v45 }
  0xd1   : > { %v356_v50 = vmul.f32 0.00390625, %v335_v47  ;;  %v341_v51 = vpop.xlane.xlu1 %340 }
  0xd2   : > { %v358_v52 = vmul.f32 0.00390625, %v341_v51 }
  0xd3   : > { %v390_v54 = vrot.slane %v356_v50, %v389_v43 }
  0xd4   : > { %v404_v58 = vrot.slane %v358_v52, %v403_v48  ;;  %v344_v59 = vpop.xlane.xlu0 %343  ;;  %v599_v48 = vsub.s32 0, %v1387_v35 }
  0xd5   : > { %v392_v62 = vsel %vm391_vm1, %v390_v54, %v385_v53  ;;  %v359_v63 = vmul.f32 0.00390625, %v344_v59  ;;  %v347_v3 = vpop.xlane.xlu1 %346 }
  0xd6   : > { %v399_v7 = vsel %vm398_vm2, %v397_v57, %v392_v62  ;;  %v360_v10 = vmul.f32 0.00390625, %v347_v3 }
  0xd7   : > { %v406_v11 = vsel %vm405_vm3, %v404_v58, %v399_v7  ;;  %v411_v16 = vrot.slane %v359_v63, %v410_v55 }
  0xd8   : > { %v418_v22 = vrot.slane %v360_v10, %v417_v60  ;;  %v350_v23 = vpop.xlane.xlu0 %349 }
  0xd9   : > { %v413_v25 = vsel %vm412_vm4, %v411_v16, %v406_v11  ;;  %v361_v26 = vmul.f32 0.00390625, %v350_v23  ;;  %v353_v27 = vpop.xlane.xlu1 %352 }
  0xda   : > { %v362_v28 = vmul.f32 0.00390625, %v353_v27  ;;  %v420_v30 = vsel %vm419_vm5, %v418_v22, %v413_v25 }
  0xdb   : > { %v425_v29 = vrot.slane %v361_v26, %v424_v17 }
  0xdc   : > { %v432_v31 = vrot.slane %v362_v28, %v431_v24 }
  0xdd   : > { %v427_v32 = vsel %vm426_vm6, %v425_v29, %v420_v30 }
  0xde   : > { %v434_v33 = vsel %vm433_vm7, %v432_v31, %v427_v32 }
  0xdf   : > { %932 = vmatmul.mubr.msk.f32.vlgmr.msra.gmra.mxu0 %vm435_vm8, %v434_v33 }
 0x19f   : > { %v504_v37 = vpop.f32.mrf.mxu0 }
 0x1a0   : > { %v505_v38 = vadd.f32 %v504_v37, %v371_v36 }
 0x1a1   : > { %v933_v39 = vpop.f32.mrf.mxu0 }
 0x1a2   : > { %v508_v40 = vmax.f32 %v505_v38, 0.0 }
 0x1a4   : > { %937 = vmatmul.mubr.msk.f32.vlgmr.msra.gmra.mxu1 %vm511_vm10, %v508_v40 }
 0x264   : > { %v585_v42 = vpop.f32.mrf.mxu1 }
 0x265   : > { %v586_v43 = vadd.f32 %v585_v42, %v510_v41 }
 0x266   : > { %v938_v44 = vpop.f32.mrf.mxu1 }
 0x267   : > { %v891_v45 = vmul.f32 -1.442695, %v586_v43 }
 0x269   : > { %1001 = vpow2.f32 %v891_v45 }
 0x276   : > { %v1002_v46 = vpop.eup %1001 }
 0x277   : > { %v592_v47 = vadd.f32 1.0, %v1002_v46 }
 0x279   : > { %1003 = vrcp.f32 %v592_v47 }
 0x286   : > { %v1004_v49 = vpop.eup %1003 }
 0x287   : > { %v600_v50 = vrot.slane %v1004_v49, %v599_v48  ;;  %596 = vst.msk [vmem:[%s313_s11] sm:$0x1] %vm595_vm11, %v1004_v49  ;;  %s1492_s11 = scalar_lea.hbm %s1610_s6, %s902_s20  ;;  %s1160_s20 = smov [#allocation5]  }
 0x288   : > { %s1037_s1 = sshll.u32 %s1160_s20, 4  ;;  %s1038_s1 = int_to_ptr.vmem [resolvable:$false] %s1037_s1 }
 0x289   : > { %606 = vbcast.lane.b32.xlu1 %v600_v50, 264  ;;  %602 = vbcast.lane.b32.xlu0 %v600_v50, 256  ;;  %p1040_p5 = scmp.lt.s32.totalorder %s1487_s22, %s1038_s1 }
 0x28d   : > { %610 = vbcast.lane.b32.xlu1 %v600_v50, 272  ;;  %618 = vbcast.lane.b32.xlu0 %v600_v50, 288 }
 0x291   : > { %614 = vbcast.lane.b32.xlu1 %v600_v50, 280  ;;  %626 = vbcast.lane.b32.xlu0 %v600_v50, 304 }
 0x295   : > { %622 = vbcast.lane.b32.xlu1 %v600_v50, 296 }
 0x299   : > { %630 = vbcast.lane.b32.xlu1 %v600_v50, 312 }
 0x2fb   : > { %v607_v51 = vpop.permute.xlu1 %606  ;;  %v603_v52 = vpop.permute.xlu0 %602 }
 0x2fc   : > { %v634_v35 = vmul.f32 %v607_v51, %v1325_v5  ;;  %v635_v53 = vmul.f32 %v607_v51, %v1327_v6  ;;  %v632_v54 = vmul.f32 %v603_v52, %v1315_v0  ;;  %v633_v55 = vmul.f32 %v603_v52, %v1317_v1 }
 0x2fe   : > { %650 = vst [vmem:[%s1416_s19 + $0x10] sm:$0xff] %v634_v35  ;;  %651 = vst [vmem:[%s1416_s19 + $0x18] sm:$0xff] %v635_v53  ;;  %v666_v56 = vsub.f32 %v1325_v5, %v634_v35  ;;  %v667_v57 = vsub.f32 %v1327_v6, %v635_v53  ;;  %v664_v58 = vsub.f32 %v1315_v0, %v632_v54 }
 0x2ff   : > { %648 = vst [vmem:[%s1416_s19] sm:$0xff] %v632_v54  ;;  %649 = vst [vmem:[%s1416_s19 + $0x8] sm:$0xff] %v633_v55  ;;  %v665_v59 = vsub.f32 %v1317_v1, %v633_v55  ;;  %v611_v60 = vpop.permute.xlu1 %610  ;;  %v619_v61 = vpop.permute.xlu0 %618 }
 0x300   : > { %682 = vst [vmem:[%s1427_s12 + $0x10] sm:$0xff] %v666_v56  ;;  %683 = vst [vmem:[%s1427_s12 + $0x18] sm:$0xff] %v667_v57  ;;  %v636_v0 = vmul.f32 %v611_v60, %v1319_v2  ;;  %v637_v1 = vmul.f32 %v611_v60, %v1323_v4  ;;  %v640_v5 = vmul.f32 %v619_v61, %v1339_v12 }
 0x301   : > { %680 = vst [vmem:[%s1427_s12] sm:$0xff] %v664_v58  ;;  %681 = vst [vmem:[%s1427_s12 + $0x8] sm:$0xff] %v665_v59  ;;  %v641_v6 = vmul.f32 %v619_v61, %v1341_v13 }
 0x302   : > { %652 = vst [vmem:[%s1416_s19 + $0x20] sm:$0xff] %v636_v0  ;;  %653 = vst [vmem:[%s1416_s19 + $0x28] sm:$0xff] %v637_v1  ;;  %v668_v62 = vsub.f32 %v1319_v2, %v636_v0  ;;  %v669_v63 = vsub.f32 %v1323_v4, %v637_v1  ;;  %v672_v3 = vsub.f32 %v1339_v12, %v640_v5 }
 0x303   : > { %656 = vst [vmem:[%s1416_s19 + $0x40] sm:$0xff] %v640_v5  ;;  %657 = vst [vmem:[%s1416_s19 + $0x48] sm:$0xff] %v641_v6  ;;  %v673_v7 = vsub.f32 %v1341_v13, %v641_v6  ;;  %v615_v10 = vpop.permute.xlu1 %614  ;;  %v627_v11 = vpop.permute.xlu0 %626 }
 0x304   : > { %684 = vst [vmem:[%s1427_s12 + $0x20] sm:$0xff] %v668_v62  ;;  %685 = vst [vmem:[%s1427_s12 + $0x28] sm:$0xff] %v669_v63  ;;  %v638_v2 = vmul.f32 %v615_v10, %v1331_v8  ;;  %v639_v4 = vmul.f32 %v615_v10, %v1333_v9  ;;  %v644_v12 = vmul.f32 %v627_v11, %v1351_v18 }
 0x305   : > { %688 = vst [vmem:[%s1427_s12 + $0x40] sm:$0xff] %v672_v3  ;;  %689 = vst [vmem:[%s1427_s12 + $0x48] sm:$0xff] %v673_v7  ;;  %v645_v13 = vmul.f32 %v627_v11, %v1353_v19 }
 0x306   : > { %654 = vst [vmem:[%s1416_s19 + $0x30] sm:$0xff] %v638_v2  ;;  %655 = vst [vmem:[%s1416_s19 + $0x38] sm:$0xff] %v639_v4  ;;  %v670_v16 = vsub.f32 %v1331_v8, %v638_v2  ;;  %v671_v17 = vsub.f32 %v1333_v9, %v639_v4  ;;  %v676_v22 = vsub.f32 %v1351_v18, %v644_v12 }
 0x307   : > { %660 = vst [vmem:[%s1416_s19 + $0x60] sm:$0xff] %v644_v12  ;;  %661 = vst [vmem:[%s1416_s19 + $0x68] sm:$0xff] %v645_v13  ;;  %v677_v23 = vsub.f32 %v1353_v19, %v645_v13  ;;  %v623_v24 = vpop.permute.xlu1 %622 }
 0x308   : > { %686 = vst [vmem:[%s1427_s12 + $0x30] sm:$0xff] %v670_v16  ;;  %687 = vst [vmem:[%s1427_s12 + $0x38] sm:$0xff] %v671_v17  ;;  %v642_v8 = vmul.f32 %v623_v24, %v1343_v14  ;;  %v643_v9 = vmul.f32 %v623_v24, %v1345_v15 }
 0x309   : > { %692 = vst [vmem:[%s1427_s12 + $0x60] sm:$0xff] %v676_v22  ;;  %693 = vst [vmem:[%s1427_s12 + $0x68] sm:$0xff] %v677_v23 }
 0x30a   : > { %658 = vst [vmem:[%s1416_s19 + $0x50] sm:$0xff] %v642_v8  ;;  %659 = vst [vmem:[%s1416_s19 + $0x58] sm:$0xff] %v643_v9  ;;  %v674_v18 = vsub.f32 %v1343_v14, %v642_v8  ;;  %v675_v19 = vsub.f32 %v1345_v15, %v643_v9 }
 0x30b   : > { %v631_v25 = vpop.permute.xlu1 %630 }
 0x30c   : > { %690 = vst [vmem:[%s1427_s12 + $0x50] sm:$0xff] %v674_v18  ;;  %691 = vst [vmem:[%s1427_s12 + $0x58] sm:$0xff] %v675_v19  ;;  %v646_v26 = vmul.f32 %v631_v25, %v1355_v20  ;;  %v647_v27 = vmul.f32 %v631_v25, %v1357_v21 }
 0x30e   : > { %662 = vst [vmem:[%s1416_s19 + $0x70] sm:$0xff] %v646_v26  ;;  %663 = vst [vmem:[%s1416_s19 + $0x78] sm:$0xff] %v647_v27  ;;  %v678_v14 = vsub.f32 %v1355_v20, %v646_v26  ;;  %v679_v15 = vsub.f32 %v1357_v21, %v647_v27  ;;  %s1039_s19 = scalar_lea.vmem %s1038_s1, 4096 }
 0x30f   : > { %p1041_p7 = scmp.lt.s32.totalorder %s1039_s19, %s1033_s18 }
 0x311   : > { %p1042_p8 = por %p1041_p7, %p1040_p5 }
 0x313   : > { %p1043_p10 = pnand %p1042_p8, %p1036_p4 }
 0x315   : > { %1046 = shalt.err (!%p1043_p10)
}
 0x316   : > { %s1047_s8 = scalar_lea.hbm %s1485_s9, 2048  ;;  %s1051_s20 = scalar_lea.hbm %s1609_s5, 4096 }
 0x317   : > { %p1048_p0 = scmp.ne.s32.totalorder %s1485_s9, %s1047_s8  ;;  %p1052_p1 = scmp.lt.s32.totalorder %s1485_s9, %s1609_s5 }
 0x318   : > { %p1053_p3 = scmp.lt.s32.totalorder %s1051_s20, %s1047_s8 }
 0x319   : > { %p1049_p2 = pnand %p1048_p0, %p1627_p12 }
 0x31a   : > { %p1054_p6 = por %p1053_p3, %p1052_p1 }
 0x31b   : > { %p1050_p9 = pneg %p1049_p2 }
 0x31d   : > { %p1055_p11 = pnand %p1054_p6, %p1050_p9 }
 0x31f   : > { %1058 = shalt.err (!%p1055_p11)
}
 0x320   : > { %s1161_s1 = smov 256   ;;  %s1162_s18 = smov 16   ;;  %694 = vst [vmem:[%s1427_s12 + $0x70] sm:$0xff] %v678_v14  ;;  %695 = vst [vmem:[%s1427_s12 + $0x78] sm:$0xff] %v679_v15 }
 0x321   : > { %s1628_s2 = scalar_lea.sflag [#allocation4], %s1304_s29  ;;  %s1629_s17 = sand.u32 1, %s1226_s28  }
 0x322   : > { %941 = dma.vmem_to_hbm [thread:$0]  (%p1627_p12), %s1487_s22, 2048, %s1485_s9, %s1628_s2, %s1161_s1, %s1161_s1, %s1162_s18  }
 0x323   : > { %s1537_s19 = scalar_lea.sflag [#allocation7], %s1629_s17  ;;  %s1059_s8 = scalar_lea.vmem %s1494_s23, 2048 }
 0x324   : > { %p1060_p13 = scmp.ne.s32.totalorder %s1494_s23, %s1059_s8  ;;  %s1163_s21 = smov [#allocation6]  }
 0x325   : > { %s1063_s16 = sshll.u32 %s1163_s21, 4  ;;  %s1064_s16 = int_to_ptr.vmem [resolvable:$false] %s1063_s16 }
 0x326   : > { %p1061_p4 = pnand %p1060_p13, %p1627_p12  ;;  %s1065_s20 = scalar_lea.vmem %s1064_s16, 4096 }
 0x327   : > { %p1066_p7 = scmp.lt.s32.totalorder %s1494_s23, %s1064_s16  ;;  %p1067_p8 = scmp.lt.s32.totalorder %s1065_s20, %s1059_s8 }
 0x328   : > { %p1062_p5 = pneg %p1061_p4 }
 0x329   : > { %p1068_p10 = por %p1067_p8, %p1066_p7 }
 0x32b   : > { %p1069_p0 = pnand %p1068_p10, %p1062_p5 }
 0x32d   : > { %1072 = shalt.err (!%p1069_p0)
}
 0x32e   : > { %s1073_s28 = scalar_lea.hbm %s1492_s11, 2048  ;;  %s1077_s22 = scalar_lea.hbm %s1610_s6, 4096 }
 0x32f   : > { %p1074_p2 = scmp.ne.s32.totalorder %s1492_s11, %s1073_s28  ;;  %p1078_p3 = scmp.lt.s32.totalorder %s1492_s11, %s1610_s6 }
 0x330   : > { %p1079_p6 = scmp.lt.s32.totalorder %s1077_s22, %s1073_s28 }
 0x331   : > { %p1075_p9 = pnand %p1074_p2, %p1627_p12 }
 0x332   : > { %p1080_p11 = por %p1079_p6, %p1078_p3 }
 0x333   : > { %p1076_p1 = pneg %p1075_p9 }
 0x335   : > { %p1081_p13 = pnand %p1080_p11, %p1076_p1 }
 0x337   : > { %1084 = shalt.err (!%p1081_p13)
}
 0x338   : > { %942 = dma.vmem_to_hbm [thread:$0]  (%p1627_p12), %s1494_s23, 2048, %s1492_s11, %s1537_s19, %s1161_s1, %s1161_s1, %s1162_s18  }
 0x339   : > { %s1085_s17 = scalar_lea.vmem %s1505_s15, 16  ;;  %s1164_s8 = smov [#allocation8]  }
 0x33a   : > { %p1086_p4 = scmp.ne.s32.totalorder %s1505_s15, %s1085_s17  ;;  %s1089_s21 = sshll.u32 %s1164_s8, 4  ;;  %s1090_s21 = int_to_ptr.vmem [resolvable:$false] %s1089_s21 }
 0x33b   : > { %s1091_s16 = scalar_lea.vmem %s1090_s21, 32  ;;  %p1092_p8 = scmp.lt.s32.totalorder %s1505_s15, %s1090_s21 }
 0x33c   : > { %p1087_p5 = pnand %p1086_p4, %p1627_p12  ;;  %p1093_p10 = scmp.lt.s32.totalorder %s1091_s16, %s1085_s17 }
 0x33e   : > { %p1088_p7 = pneg %p1087_p5  ;;  %p1094_p0 = por %p1093_p10, %p1092_p8 }
 0x340   : > { %p1095_p2 = pnand %p1094_p0, %p1088_p7 }
 0x342   : > { %1098 = shalt.err (!%p1095_p2)
}
 0x343   : > { %s1099_s20 = scalar_lea.hbm %s1503_s0, 16  ;;  %s1103_s1 = scalar_lea.hbm %s1611_s7, 32 }
 0x344   : > { %p1100_p9 = scmp.ne.s32.totalorder %s1503_s0, %s1099_s20  ;;  %p1104_p6 = scmp.lt.s32.totalorder %s1503_s0, %s1611_s7 }
 0x345   : > { %p1105_p11 = scmp.lt.s32.totalorder %s1103_s1, %s1099_s20 }
 0x346   : > { %p1101_p1 = pnand %p1100_p9, %p1627_p12 }
 0x347   : > { %p1106_p13 = por %p1105_p11, %p1104_p6 }
 0x348   : > { %p1102_p3 = pneg %p1101_p1 }
 0x34a   : > { %p1107_p4 = pnand %p1106_p13, %p1102_p3 }
 0x34c   : > { %1110 = shalt.err (!%p1107_p4)
}
 0x34d   : > { %943 = dma.vmem_to_hbm [thread:$0]  (%p1627_p12), %s1505_s15, 16, %s1503_s0, %s1537_s19  }
 0x34e PF: > { %s763_s29 = sand.u32 1, %s1141_s24   ;;  %p1630_p5 = scmp.ne.s32.totalorder %s1621_s14, 0 }
 0x34f   : > { %p1631_p7 = scmp.ge.s32.totalorder %s1153_s27, 2  ;;  %s764_s12 = scalar_lea.sflag [#allocation4], %s763_s29 }
 0x351   : > { %p952_p8 = pnand %p1631_p7, %p1630_p5 }
 0x353   : > { %p953_p10 = pneg %p952_p8 }
 0x355   : > { %1132 = dma.done.wait (%p953_p10), %s764_s12, 2048  }
 0x356   : > { %1134 = vsyncadd (%p953_p10), %s764_s12, 4294965248  ;;  %s1632_s22 = sadd.s32 4294967294, %s1153_s27  }
 0x357   : > { %s772_s9 = sand.u32 1, %s1632_s22  }
 0x358   : > { %s773_s13 = scalar_lea.sflag [#allocation7], %s772_s9 }
 0x359   : > { %1136 = dma.done.wait (%p953_p10), %s773_s13, 2064  }
 0x35a   : > { %1138 = vsyncadd (%p953_p10), %s773_s13, 4294965232  ;;  %p24_p12 = scmp.ge.s32.totalorder %s1230_s30, 4   ;;  %s1633_s24 = smov %s1145_s25 }
 0x35b   : > { %s1634_s25 = smov %s1149_s26  ;;  %s1635_s26 = smov %s1242_s10 }
 0x35c   : > { %s1636_s27 = smov %s1230_s30  ;;  %26 = sbr.rel (!%p24_p12) target bundleno = 11 (0xb), region = 117 }
 0x361   :  { %786 = vsyncpa [#allocation3], 1 }
 0x362   :  { %788 = vsyncpa [#allocation3 + $0x1], 1 }
 0x363   :  { %789 = vsyncpa [#allocation4], 1 }
 0x364   :  { %791 = vsyncpa [#allocation4 + $0x1], 1 }
 0x365   :  { %792 = vsyncpa [#allocation7], 1 }
 0x366   :  { %794 = vsyncpa [#allocation7 + $0x1], 1 }

</bundles_post_ra>
